<compile_context>
chip_gen: v5e
topology: v5e:2x2
jax: 0.10.0
libtpu: 0.0.40
codegen_flags: <defaults>
</compile_context>

<pallas_src>
import math

import jax
import jax.numpy as jnp
from jax.experimental import pallas as pl
from jax.experimental.pallas import tpu as pltpu


# Budget for the double-buffered streaming blocks (x, mask, out).  12 MiB
# keeps us well inside the 32 MiB scoped VMEM limit we request below, while
# leaving room for the resident weight and Mosaic's internal scratch.
_VMEM_BLOCK_BUDGET = 12 * 1024 * 1024
# Raise the scoped VMEM limit (v5e default is 16 MiB); 32 MiB is under the
# physical VMEM of every generation (64 MiB on v7x, 128 MiB on v5e/v6e).
_VMEM_LIMIT_BYTES = 32 * 1024 * 1024
# Max packed lane width for the lane-dense folding (weight is Dp x Dp f32,
# kept VMEM-resident, so cap it at 1024 lanes = 4 MiB).
_MAX_PACKED_LANES = 1024


def _round_up(n: int, m: int) -> int:
    return ((n + m - 1) // m) * m


def _implicit_imputation_kernel(x_ref, mask_ref, wt_ref, out_ref):
    x = x_ref[...]            # [TILE, Dp]
    mask = mask_ref[...]      # [TILE, Dp]
    wt = wt_ref[...]          # [Dp, Dp]  (pre-transposed / block-diagonal)

    # MXU matmul with f32 accumulation; no transpose inside the kernel.
    imputation = jnp.dot(x, wt, preferred_element_type=jnp.float32)

    # Elementwise mix in f32 — reference uses (1 - X), not (1 - mask).
    xf = x.astype(jnp.float32)
    mf = mask.astype(jnp.float32)
    out_ref[...] = (xf * mf + imputation * (1.0 - xf)).astype(out_ref.dtype)


def implicit_imputation(X, missing_mask, W, *, tile_rows: int = 4096):
    """X, missing_mask: [B, T, D]; W: [D, D] (nn.Linear convention).

    Returns [B, T, D] = X * missing_mask + (X @ W.T) * (1 - X).
    """
    B, T, D = X.shape
    N = B * T
    out_dtype = X.dtype
    x2d = X.reshape(N, D)
    m2d = missing_mask.reshape(N, D)

    # Transpose hoisted out of the kernel (no per-tile XLU transpose).
    Wt = W.T

    # ---- lane-dense packing: fold P rows of width D into one packed row ----
    # Packed width Dp = D * P is a multiple of 128 whenever feasible, so every
    # load/store is a full unmasked 128-lane vreg.  Pure view, no data moved.
    if D % 128 == 0:
        P = 1
    else:
        lcm = math.lcm(D, 128)
        if lcm <= _MAX_PACKED_LANES:
            P = lcm // D
        else:
            # TODO(synk): awkward large D (lcm(D,128) too big) falls back to a
            # non-lane-dense last dim (masked stores); still correct.
            P = 1
    Dp = D * P

    # Block-diagonal weight (built once in the wrapper, stays VMEM-resident).
    Wp = Wt if P == 1 else jnp.kron(jnp.eye(P, dtype=Wt.dtype), Wt)

    N_main = (N // P) * P          # rows handled by the packed kernel
    Np = N_main // P               # packed rows
    tail = N - N_main              # 0 <= tail < P leftover rows

    pieces = []

    if Np > 0:
        # Contiguous-prefix slice + reshape are views (no HBM copies).
        xp = x2d[:N_main].reshape(Np, Dp)
        mp = m2d[:N_main].reshape(Np, Dp)

        # ---- tile selection: big, VMEM-budgeted, multiple of 8 -------------
        bytes_per_row = 2 * Dp * (xp.dtype.itemsize
                                  + mp.dtype.itemsize
                                  + jnp.dtype(out_dtype).itemsize)
        max_rows_vmem = max(8, (_VMEM_BLOCK_BUDGET // bytes_per_row) // 8 * 8)
        tile = min(tile_rows, max_rows_vmem, _round_up(Np, 8))
        tile = max(8, _round_up(tile, 8))

        # No row padding: pl.cdiv grid + Pallas boundary masking handles the
        # remainder block (rows are independent; overhang is never stored).
        grid = (pl.cdiv(Np, tile),)

        out_main = pl.pallas_call(
            _implicit_imputation_kernel,
            out_shape=jax.ShapeDtypeStruct((Np, Dp), out_dtype),
            grid=grid,
            in_specs=[
                pl.BlockSpec((tile, Dp), lambda i: (i, 0)),
                pl.BlockSpec((tile, Dp), lambda i: (i, 0)),
                pl.BlockSpec((Dp, Dp), lambda i: (0, 0)),   # weight resident
            ],
            out_specs=pl.BlockSpec((tile, Dp), lambda i: (i, 0)),
            compiler_params=pltpu.CompilerParams(
                dimension_semantics=("parallel",),
                vmem_limit_bytes=_VMEM_LIMIT_BYTES,
            ),
        )(xp, mp, Wp)
        pieces.append(out_main.reshape(N_main, D))

    if tail > 0:
        # Tiny epilogue (< P rows) in plain jnp — avoids padding the slab.
        tx = x2d[N_main:].astype(jnp.float32)
        tm = m2d[N_main:].astype(jnp.float32)
        timp = jnp.dot(tx, Wt.astype(jnp.float32))
        pieces.append((tx * tm + timp * (1.0 - tx)).astype(out_dtype))

    out = pieces[0] if len(pieces) == 1 else jnp.concatenate(pieces, axis=0)
    return out.reshape(B, T, D)


def _reference(X, missing_mask, W):
    imputation = jnp.einsum("btd,od->bto", X, W)
    return X * missing_mask + imputation * (1.0 - X)


if __name__ == "__main__":
    key = jax.random.PRNGKey(0)

    # ---- Check 1: small shapes consistent with the module -----------------
    B, T, D = 2, 8, 32
    kx, km, kw = jax.random.split(key, 3)
    X = jax.random.normal(kx, (B, T, D), dtype=jnp.float32)
    missing_mask = (jax.random.uniform(km, (B, T, D)) > 0.3).astype(jnp.float32)
    bound = 1.0 / jnp.sqrt(jnp.float32(D))
    W = jax.random.uniform(kw, (D, D), minval=-bound, maxval=bound,
                           dtype=jnp.float32)

    out = jax.block_until_ready(implicit_imputation(X, missing_mask, W))
    ref = _reference(X, missing_mask, W)
    assert out.shape == (B, T, D)
    assert jnp.allclose(out, ref, atol=1e-5, rtol=1e-5), "mismatch vs reference"

    # ---- Check 2: multi-step grid + boundary-masked remainder block -------
    # N=200 -> Np=50 packed rows; tile_rows=16 -> grid=4 with a partial block.
    B2, T2 = 2, 100
    kx2, km2 = jax.random.split(kx, 2)
    X2 = jax.random.normal(kx2, (B2, T2, D), dtype=jnp.float32)
    M2 = (jax.random.uniform(km2, (B2, T2, D)) > 0.5).astype(jnp.float32)
    out2 = jax.block_until_ready(implicit_imputation(X2, M2, W, tile_rows=16))
    ref2 = _reference(X2, M2, W)
    assert jnp.allclose(out2, ref2, atol=1e-5, rtol=1e-5), "mismatch (tiled)"

    # ---- Check 3: packing-remainder epilogue (N % P != 0) -----------------
    # N=18, P=4 -> 16 rows via the kernel + 2-row jnp epilogue, no padding.
    B3, T3 = 2, 9
    kx3, km3 = jax.random.split(km, 2)
    X3 = jax.random.normal(kx3, (B3, T3, D), dtype=jnp.float32)
    M3 = (jax.random.uniform(km3, (B3, T3, D)) > 0.4).astype(jnp.float32)
    out3 = jax.block_until_ready(implicit_imputation(X3, M3, W))
    ref3 = _reference(X3, M3, W)
    assert jnp.allclose(out3, ref3, atol=1e-5, rtol=1e-5), "mismatch (tail)"

    # ---- Check 4: generalized lane-dense packing (D=48 -> Dp=384, P=8) ----
    D4, B4, T4 = 48, 2, 40
    kx4, km4, kw4 = jax.random.split(kw, 3)
    X4 = jax.random.normal(kx4, (B4, T4, D4), dtype=jnp.float32)
    M4 = (jax.random.uniform(km4, (B4, T4, D4)) > 0.3).astype(jnp.float32)
    b4 = 1.0 / jnp.sqrt(jnp.float32(D4))
    W4 = jax.random.uniform(kw4, (D4, D4), minval=-b4, maxval=b4,
                            dtype=jnp.float32)
    out4 = jax.block_until_ready(implicit_imputation(X4, M4, W4))
    ref4 = _reference(X4, M4, W4)
    assert jnp.allclose(out4, ref4, atol=1e-5, rtol=1e-5), "mismatch (lcm pack)"

    print("KERNEL_OK")
</pallas_src>

<mosaic_0001>
module attributes {stable_mosaic.version = 11 : i64} {
  func.func @_implicit_imputation_kernel(%arg0: i32, %arg1: memref<8x128xf32, #tpu.memory_space<vmem>>, %arg2: memref<8x128xf32, #tpu.memory_space<vmem>>, %arg3: memref<128x128xf32, #tpu.memory_space<vmem>>, %arg4: memref<8x128xf32, #tpu.memory_space<vmem>>) attributes {dimension_semantics = [#tpu.dimension_semantics<parallel>], iteration_bounds = array<i64: 1>, scalar_prefetch = 0 : i64, scratch_operands = 0 : i64, tpu.core_type = #tpu.core_type<tc>, window_params = [{transform_indices = @transform_0, window_bounds = array<i64: 8, 128>}, {transform_indices = @transform_1, window_bounds = array<i64: 8, 128>}, {pipeline_mode = #tpu.pipeline_mode<synchronous>, transform_indices = @transform_2, window_bounds = array<i64: 128, 128>}, {transform_indices = @transform_3, window_bounds = array<i64: 8, 128>}]} {
    %c0 = arith.constant 0 : index
    %c0_0 = arith.constant 0 : index
    %0 = vector.load %arg1[%c0, %c0_0] : memref<8x128xf32, #tpu.memory_space<vmem>>, vector<8x128xf32>
    %c0_1 = arith.constant 0 : index
    %c0_2 = arith.constant 0 : index
    %1 = vector.load %arg2[%c0_1, %c0_2] : memref<8x128xf32, #tpu.memory_space<vmem>>, vector<8x128xf32>
    %c0_3 = arith.constant 0 : index
    %c0_4 = arith.constant 0 : index
    %2 = vector.load %arg3[%c0_3, %c0_4] : memref<128x128xf32, #tpu.memory_space<vmem>>, vector<128x128xf32>
    %cst = arith.constant dense<0.000000e+00> : vector<8x128xf32>
    %3 = tpu.matmul %0, %2, %cst {dimension_numbers = #tpu.dot_dimension_numbers<[1], [0], [0], [1], [0, 0, 1, 1], [], []>} : vector<8x128xf32>, vector<128x128xf32>, vector<8x128xf32> -> vector<8x128xf32>
    %4 = arith.mulf %0, %1 : vector<8x128xf32>
    %cst_5 = arith.constant 1.000000e+00 : f32
    %5 = vector.broadcast %cst_5 : f32 to vector<8x128xf32>
    %6 = arith.subf %5, %0 : vector<8x128xf32>
    %7 = arith.mulf %3, %6 : vector<8x128xf32>
    %8 = arith.addf %4, %7 : vector<8x128xf32>
    %c0_6 = arith.constant 0 : index
    %c0_7 = arith.constant 0 : index
    %9 = vector.load %arg4[%c0_6, %c0_7] : memref<8x128xf32, #tpu.memory_space<vmem>>, vector<8x128xf32>
    tpu.vector_store %arg4[%c0_6, %c0_7], %8 {strides = array<i32>} : memref<8x128xf32, #tpu.memory_space<vmem>>, vector<8x128xf32>,
    return
  }
  func.func @transform_0(%arg0: i32) -> (i32, i32) {
    %c0_i32 = arith.constant 0 : i32
    %c0_i32_0 = arith.constant 0 : i32
    return %arg0, %c0_i32 : i32, i32
  }
  func.func @transform_1(%arg0: i32) -> (i32, i32) {
    %c0_i32 = arith.constant 0 : i32
    %c0_i32_0 = arith.constant 0 : i32
    return %arg0, %c0_i32 : i32, i32
  }
  func.func @transform_2(%arg0: i32) -> (i32, i32) {
    %c0_i32 = arith.constant 0 : i32
    %c0_i32_0 = arith.constant 0 : i32
    %c0_i32_1 = arith.constant 0 : i32
    return %c0_i32, %c0_i32_0 : i32, i32
  }
  func.func @transform_3(%arg0: i32) -> (i32, i32) {
    %c0_i32 = arith.constant 0 : i32
    %c0_i32_0 = arith.constant 0 : i32
    return %arg0, %c0_i32 : i32, i32
  }
}

</mosaic_0001>

<bundles_post_ra>
// kernel: tpu_custom_call.1
= control target key start
LH: loop header
LB: loop body
LE: loop exit
PB: predicated region body
PF: predicated region fallthrough
CT: control target
= control target key end

     0   :  { %8 = vsyncpa [#allocation3], 0  ;;  %s284_s0 = inlined_call_operand.hbm [shape: f32[4,128], index: 0, kind: input, shape index: {}]   ;;  %s285_s1 = inlined_call_operand.hbm [shape: f32[4,128], index: 1, kind: input, shape index: {}]   ;;  %s286_s2 = inlined_call_operand.hbm [shape: f32[128,128], index: 2, kind: input, shape index: {}]   ;;  %s287_s3 = inlined_call_operand.hbm [shape: f32[4,128], index: 3, kind: output, shape index: {}]  }
   0x1   :  { %9 = vsyncpa [#allocation6], 0 }
   0x2   :  { %10 = vsyncpa [#allocation4], 0 }
   0x3   :  { %14 = vsyncadd [#allocation3], 64  ;;  %s15_s14 = sshll.u32 %s284_s0, 4  ;;  %s235_s15 = smov [#allocation2]   ;;  %s16_s14 = int_to_ptr.hbm [resolvable:$true] %s15_s14 }
   0x4   :  { %s17_s16 = sshll.u32 %s235_s15, 4  ;;  %s236_s17 = smov 64   ;;  %s18_s16 = int_to_ptr.vmem [resolvable:$true] %s17_s16 }
   0x5   :  { %s237_s18 = smov 4  }
   0x6   :  { %23 = dma.hbm_to_vmem [thread:$0]  %s16_s14, 64, %s18_s16, [#allocation3], %s236_s17, %s236_s17, %s237_s18  }
   0x7   :  { %27 = vsyncadd [#allocation6], 64  ;;  %s28_s21 = sshll.u32 %s285_s1, 4  ;;  %s238_s22 = smov [#allocation5]   ;;  %s29_s21 = int_to_ptr.hbm [resolvable:$true] %s28_s21 }
   0x8   :  { %s30_s23 = sshll.u32 %s238_s22, 4  ;;  %s41_s25 = sshll.u32 %s286_s2, 4  ;;  %s31_s23 = int_to_ptr.vmem [resolvable:$true] %s30_s23  ;;  %s42_s25 = int_to_ptr.hbm [resolvable:$true] %s41_s25 }
   0x9   :  { %36 = dma.hbm_to_vmem [thread:$0]  %s29_s21, 64, %s31_s23, [#allocation6], %s236_s17, %s236_s17, %s237_s18  }
   0xa   :  { %s239_s26 = smov [#allocation7]   ;;  %s240_s28 = smov 128  }
   0xb   :  { %s43_s27 = sshll.u32 %s239_s26, 4  ;;  %s241_s29 = smov 8   ;;  %s44_s27 = int_to_ptr.vmem [resolvable:$true] %s43_s27 }
   0xc   :  { %49 = dma.hbm_to_vmem [thread:$0]  %s42_s25, 2048, %s44_s27, [#allocation6], %s240_s28, %s240_s28, %s241_s29  }
   0xd   :  { %229 = dma.done.wait [#allocation3], 128  }
   0xe   :  { %230 = vsyncadd [#allocation3], 4294967168 }
   0xf   :  { %231 = dma.done.wait [#allocation6], 2176  }
  0x10   :  { %232 = vsyncadd [#allocation6], 4294965120  ;;  %v79_v0 = vld [vmem:[#allocation7 + $0x78] sm:$0xff]  ;;  %v78_v1 = vld [vmem:[#allocation7 + $0x70] sm:$0xff] }
  0x11   :  { %80 = vmatpush.msra.mxu0 %v79_v0  ;;  %v77_v2 = vld [vmem:[#allocation7 + $0x68] sm:$0xff]  ;;  %v76_v3 = vld [vmem:[#allocation7 + $0x60] sm:$0xff]  ;;  %v75_v4 = vld [vmem:[#allocation7 + $0x58] sm:$0xff] }
  0x12   :  { %v74_v5 = vld [vmem:[#allocation7 + $0x50] sm:$0xff]  ;;  %v73_v6 = vld [vmem:[#allocation7 + $0x48] sm:$0xff]  ;;  %v72_v7 = vld [vmem:[#allocation7 + $0x40] sm:$0xff] }
  0x13   :  { %81 = vmatpush.msra.mxu0 %v78_v1  ;;  %v71_v8 = vld [vmem:[#allocation7 + $0x38] sm:$0xff]  ;;  %v70_v9 = vld [vmem:[#allocation7 + $0x30] sm:$0xff]  ;;  %v69_v10 = vld [vmem:[#allocation7 + $0x28] sm:$0xff] }
  0x14   :  { %v68_v11 = vld [vmem:[#allocation7 + $0x20] sm:$0xff]  ;;  %v67_v12 = vld [vmem:[#allocation7 + $0x18] sm:$0xff]  ;;  %v66_v13 = vld [vmem:[#allocation7 + $0x10] sm:$0xff] }
  0x15   :  { %82 = vmatpush.msra.mxu0 %v77_v2  ;;  %v65_v14 = vld [vmem:[#allocation7 + $0x8] sm:$0xff]  ;;  %v64_v15 = vld [vmem:[#allocation7] sm:$0xff]  ;;  %v62_v16 = vld [vmem:[#allocation2] sm:$0xff] }
  0x16   :  { %v63_v17 = vld [vmem:[#allocation5] sm:$0xff]  ;;  %v101_v18 = vsub.f32 1.0, %v62_v16 }
  0x17   :  { %83 = vmatpush.msra.mxu0 %v76_v3  ;;  %v100_v19 = vmul.f32 %v63_v17, %v62_v16 }
  0x19   :  { %84 = vmatpush.msra.mxu0 %v75_v4 }
  0x1b   :  { %85 = vmatpush.msra.mxu0 %v74_v5 }
  0x1d   :  { %86 = vmatpush.msra.mxu0 %v73_v6 }
  0x1f   :  { %87 = vmatpush.msra.mxu0 %v72_v7 }
  0x21   :  { %88 = vmatpush.msra.mxu0 %v71_v8 }
  0x23   :  { %89 = vmatpush.msra.mxu0 %v70_v9 }
  0x25   :  { %90 = vmatpush.msra.mxu0 %v69_v10 }
  0x27   :  { %91 = vmatpush.msra.mxu0 %v68_v11 }
  0x29   :  { %92 = vmatpush.msra.mxu0 %v67_v12 }
  0x2b   :  { %93 = vmatpush.msra.mxu0 %v66_v13 }
  0x2d   :  { %94 = vmatpush.msra.mxu0 %v65_v14 }
  0x2f   :  { %95 = vmatpush.msra.mxu0 %v64_v15 }
  0x30   :  { %96 = vmatmul.f32.vlgmr.msra.gmra.mxu0 %v62_v16 }
  0xad   :  { %v97_v20 = vpop.f32.mrf.mxu0 }
  0xae   :  { %v102_v21 = vmul.f32 %v101_v18, %v97_v20 }
  0xb0   :  { %v103_v22 = vadd.f32 %v102_v21, %v100_v19 }
  0xb2   :  { %104 = vst [vmem:[#allocation8] sm:$0xff] %v103_v22 }
  0xb3   :  { %108 = vsyncadd [#allocation4], 64  ;;  %s111_s30 = sshll.u32 %s287_s3, 4  ;;  %s242_s4 = smov [#allocation8]   ;;  %s112_s30 = int_to_ptr.hbm [resolvable:$true] %s111_s30 }
  0xb4   :  { %s109_s5 = sshll.u32 %s242_s4, 4  ;;  %s110_s5 = int_to_ptr.vmem [resolvable:$true] %s109_s5 }
  0xb5   :  { %117 = dma.vmem_to_hbm [thread:$0]  %s110_s5, 64, %s112_s30, [#allocation4], %s236_s17, %s236_s17, %s237_s18  }
  0xb6   :  { %233 = dma.done.wait [#allocation4], 128  }
  0xb7   :  { %234 = vsyncadd [#allocation4], 4294967168 }
  0xb8   :  { %122 = vsyncpa [#allocation3], 1 }
  0xb9   :  { %123 = vsyncpa [#allocation6], 1 }
  0xba   :  { %124 = vsyncpa [#allocation4], 1 }

</bundles_post_ra>
